<compile_context>
chip_gen: v6e
topology: v6e:2x2x1
jax: 0.10.0
libtpu: 0.0.40
codegen_flags: <defaults>
</compile_context>

<pallas_src>
import numpy as np
import jax
import jax.numpy as jnp
from jax.experimental import pallas as pl
from jax.experimental.pallas import tpu as pltpu


def _round_up(v, m):
    return ((v + m - 1) // m) * m


def fgl_kernel(x_ref, at_ref, ut_ref, w_ref, bias_ref, o_ref):
    # x_ref   : (B, inc_p, inn)      compute dtype (bf16 or f32)
    # at_ref  : (inn, outn_p)        compute dtype  (densified, degree-normalized A, transposed)
    # ut_ref  : (inc_p, outn_p)      f32            (per-(output-node, channel) scale, transposed)
    # w_ref   : (outc_p, inc_p)      compute dtype  (weight-norm linear weight)
    # bias_ref: (outc_p, outn_p)     f32            (bias + b_lin folded in)
    # o_ref   : (B, outc_p, outn_p)  f32
    B, inc_p, inn = x_ref.shape
    outn_p = at_ref.shape[1]

    # One big matmul for the whole batch block: M = B*inc_p rows on the MXU.
    x2d = x_ref[...].reshape(B * inc_p, inn)
    pooled = jnp.dot(x2d, at_ref[...],
                     preferred_element_type=jnp.float32)           # (B*inc_p, outn_p) f32
    pooled = pooled.reshape(B, inc_p, outn_p)

    scaled = pooled * ut_ref[...][None, :, :]                      # f32, VPU
    w = w_ref[...]
    bias = bias_ref[...]
    scaled_c = scaled.astype(w.dtype)                              # keep 2nd matmul in compute dtype

    for b in range(B):                                             # small static unroll
        y_b = jnp.dot(w, scaled_c[b],
                      preferred_element_type=jnp.float32)          # (outc_p, outn_p)
        o_ref[b] = (y_b + bias).astype(o_ref.dtype)


def prepare_params(A_dense, u, w_eff, b_lin, bias, compute_dtype=jnp.bfloat16):
    """Host-side, done once per model: pad to lane/sublane multiples, transpose,
    fold b_lin into bias, cast matmul operands to the compute dtype."""
    outn, inn = A_dense.shape
    outc, inc = w_eff.shape
    outn_p = _round_up(outn, 128)   # lane dim of pooled/scaled/bias/output
    inc_p = _round_up(inc, 8)       # sublane dims
    outc_p = _round_up(outc, 8)

    a_t = jnp.zeros((inn, outn_p), jnp.float32).at[:, :outn].set(
        jnp.asarray(A_dense).T).astype(compute_dtype)
    u_t = jnp.zeros((inc_p, outn_p), jnp.float32).at[:inc, :outn].set(
        jnp.asarray(u).T)
    w_p = jnp.zeros((outc_p, inc_p), jnp.float32).at[:outc, :inc].set(
        jnp.asarray(w_eff)).astype(compute_dtype)
    bias_total = jnp.zeros((outc_p, outn_p), jnp.float32).at[:outc, :outn].set(
        jnp.asarray(bias) + jnp.asarray(b_lin)[:, None])

    return dict(a_t=a_t, u_t=u_t, w=w_p, bias=bias_total,
                inc=inc, inn=inn, outc=outc, outn=outn)


def fgl_v2_forward(x, params, *, block_n=8):
    """x: (N, inc, inn) f32. Returns y: (N, outc, outn) f32."""
    a_t, u_t, w, bias = params["a_t"], params["u_t"], params["w"], params["bias"]
    inc, outc, outn = params["inc"], params["outc"], params["outn"]
    inn, outn_p = a_t.shape
    inc_p = u_t.shape[0]
    outc_p = w.shape[0]
    compute_dtype = a_t.dtype

    N = x.shape[0]
    B = int(block_n)
    N_p = _round_up(N, B)
    # Pad batch to a multiple of B, channels to inc_p; cast once to compute dtype.
    x_p = jnp.zeros((N_p, inc_p, inn), compute_dtype).at[:N, :inc, :].set(
        x.astype(compute_dtype))

    flops = 2 * N_p * outn_p * inc_p * (inn + outc_p)
    bytes_accessed = int(
        x_p.size * x_p.dtype.itemsize
        + a_t.size * a_t.dtype.itemsize
        + u_t.size * u_t.dtype.itemsize
        + w.size * w.dtype.itemsize
        + bias.size * bias.dtype.itemsize
        + N_p * outc_p * outn_p * 4)

    out = pl.pallas_call(
        fgl_kernel,
        out_shape=jax.ShapeDtypeStruct((N_p, outc_p, outn_p), jnp.float32),
        grid_spec=pltpu.PrefetchScalarGridSpec(
            num_scalar_prefetch=0,
            grid=(N_p // B,),
            in_specs=[
                pl.BlockSpec((B, inc_p, inn), lambda n: (n, 0, 0)),   # x (streamed)
                pl.BlockSpec((inn, outn_p), lambda n: (0, 0)),        # A^T (grid-invariant)
                pl.BlockSpec((inc_p, outn_p), lambda n: (0, 0)),      # u^T
                pl.BlockSpec((outc_p, inc_p), lambda n: (0, 0)),      # W_eff
                pl.BlockSpec((outc_p, outn_p), lambda n: (0, 0)),     # bias (+ b_lin)
            ],
            out_specs=pl.BlockSpec((B, outc_p, outn_p), lambda n: (n, 0, 0)),
        ),
        compiler_params=pltpu.CompilerParams(
            dimension_semantics=("parallel",)),
        cost_estimate=pl.CostEstimate(flops=flops, transcendentals=0,
                                      bytes_accessed=bytes_accessed),
    )(x_p, a_t, u_t, w, bias)

    return out[:N, :outc, :outn]


def build_params(key, inc, inn, outc, outn, adj_list):
    """Deterministic parameter construction mirroring FGL_v2.__init__
    (A_options='none_norm', bias_type='nc')."""
    k_w, k_v, k_blin, k_bias = jax.random.split(key, 4)

    # weight: (outn, 1, inc), sqrt(2/outn) * U(-1, 1)
    weight = np.sqrt(2.0 / outn) * (
        -1.0 + 2.0 * jax.random.uniform(k_w, (outn, 1, inc), dtype=jnp.float32))
    u = jnp.asarray(weight)[:, 0, :]                              # (outn, inc)

    # channel_transform = weight_norm(nn.Linear(inc, outc))
    bound = 1.0 / np.sqrt(inc)
    v = jax.random.uniform(k_v, (outc, inc), dtype=jnp.float32,
                           minval=-bound, maxval=bound)
    v_norm = jnp.sqrt(jnp.sum(v * v, axis=1, keepdims=True))
    g = v_norm                                                    # torch weight_norm init: g = ||v||
    w_eff = g * v / v_norm                                        # (outc, inc)
    b_lin = jax.random.uniform(k_blin, (outc,), dtype=jnp.float32,
                               minval=-bound, maxval=bound)

    # bias_type 'nc': (outc, outn)
    bias = 0.2 * jax.random.normal(k_bias, (outc, outn), dtype=jnp.float32)

    # Densified, degree-normalized adjacency ('_norm' suffix) -> (outn, inn)
    A_dense = np.zeros((outn, inn), dtype=np.float32)
    for o, al in enumerate(adj_list):
        deg = float(len(al))
        for j in al:
            A_dense[o, j] += 1.0 / (1e-8 + deg)
    A_dense = jnp.asarray(A_dense)

    return u, w_eff, b_lin, bias, A_dense


def reference_forward(x, A_dense, u, w_eff, b_lin, bias):
    # pure-JAX f32 reference of the same math
    pooled = jnp.einsum('nci,oi->nco', x, A_dense)     # (N, inc, outn)
    scaled = pooled * u.T[None, :, :]                  # (N, inc, outn)
    y = jnp.einsum('kc,nco->nko', w_eff, scaled)       # (N, outc, outn)
    return y + b_lin[None, :, None] + bias[None, :, :]


if __name__ == "__main__":
    # Small shapes consistent with the module.
    N, inc, inn, outc, outn = 4, 4, 16, 8, 12

    # Deterministic adjacency list: outn lists of indices < inn, varying degree.
    adj_list = [[(3 * o + d) % inn for d in range(1 + (o % 4))] for o in range(outn)]

    key = jax.random.PRNGKey(0)
    k_x, k_p = jax.random.split(key)
    x = jax.random.normal(k_x, (N, inc, inn), dtype=jnp.float32)

    u, w_eff, b_lin, bias, A_dense = build_params(k_p, inc, inn, outc, outn, adj_list)
    y_ref = reference_forward(x, A_dense, u, w_eff, b_lin, bias)

    # f32 compute path (tight tolerance), grid of 2 steps with B=2.
    params_f32 = prepare_params(A_dense, u, w_eff, b_lin, bias,
                                compute_dtype=jnp.float32)
    y_f32 = jax.block_until_ready(fgl_v2_forward(x, params_f32, block_n=2))
    assert y_f32.shape == (N, outc, outn)
    np.testing.assert_allclose(np.asarray(y_f32), np.asarray(y_ref),
                               rtol=1e-5, atol=1e-5)

    # bf16 matmul path (v6e/v7x fast path), single grid step with batch padding.
    params_bf16 = prepare_params(A_dense, u, w_eff, b_lin, bias,
                                 compute_dtype=jnp.bfloat16)
    y_bf16 = jax.block_until_ready(fgl_v2_forward(x, params_bf16, block_n=8))
    assert y_bf16.shape == (N, outc, outn)
    np.testing.assert_allclose(np.asarray(y_bf16), np.asarray(y_ref),
                               rtol=5e-2, atol=5e-2)

    print("KERNEL_OK")
</pallas_src>

<mosaic_0001>
module attributes {stable_mosaic.version = 11 : i64} {
  func.func @fgl_kernel(%arg0: i32, %arg1: memref<2x8x16xf32, #tpu.memory_space<vmem>>, %arg2: memref<16x128xf32, #tpu.memory_space<vmem>>, %arg3: memref<8x128xf32, #tpu.memory_space<vmem>>, %arg4: memref<8x8xf32, #tpu.memory_space<vmem>>, %arg5: memref<8x128xf32, #tpu.memory_space<vmem>>, %arg6: memref<2x8x128xf32, #tpu.memory_space<vmem>>) attributes {dimension_semantics = [#tpu.dimension_semantics<parallel>], iteration_bounds = array<i64: 2>, scalar_prefetch = 0 : i64, scratch_operands = 0 : i64, tpu.core_type = #tpu.core_type<tc>, window_params = [{transform_indices = @transform_0, window_bounds = array<i64: 2, 8, 16>}, {pipeline_mode = #tpu.pipeline_mode<synchronous>, transform_indices = @transform_1, window_bounds = array<i64: 16, 128>}, {pipeline_mode = #tpu.pipeline_mode<synchronous>, transform_indices = @transform_2, window_bounds = array<i64: 8, 128>}, {pipeline_mode = #tpu.pipeline_mode<synchronous>, transform_indices = @transform_3, window_bounds = array<i64: 8, 8>}, {pipeline_mode = #tpu.pipeline_mode<synchronous>, transform_indices = @transform_4, window_bounds = array<i64: 8, 128>}, {transform_indices = @transform_5, window_bounds = array<i64: 2, 8, 128>}]} {
    %c0 = arith.constant 0 : index
    %c0_0 = arith.constant 0 : index
    %c0_1 = arith.constant 0 : index
    %0 = vector.load %arg1[%c0, %c0_0, %c0_1] : memref<2x8x16xf32, #tpu.memory_space<vmem>>, vector<2x8x16xf32>
    %1 = vector.shape_cast %0 : vector<2x8x16xf32> to vector<16x16xf32>
    %c0_2 = arith.constant 0 : index
    %c0_3 = arith.constant 0 : index
    %2 = vector.load %arg2[%c0_2, %c0_3] : memref<16x128xf32, #tpu.memory_space<vmem>>, vector<16x128xf32>
    %cst = arith.constant dense<0.000000e+00> : vector<16x128xf32>
    %3 = tpu.matmul %1, %2, %cst {dimension_numbers = #tpu.dot_dimension_numbers<[1], [0], [0], [1], [0, 0, 1, 1], [], []>} : vector<16x16xf32>, vector<16x128xf32>, vector<16x128xf32> -> vector<16x128xf32>
    %4 = vector.shape_cast %3 : vector<16x128xf32> to vector<2x8x128xf32>
    %c0_4 = arith.constant 0 : index
    %c0_5 = arith.constant 0 : index
    %5 = vector.load %arg3[%c0_4, %c0_5] : memref<8x128xf32, #tpu.memory_space<vmem>>, vector<8x128xf32>
    %6 = vector.shape_cast %5 : vector<8x128xf32> to vector<1x8x128xf32>
    %7 = vector.broadcast %6 : vector<1x8x128xf32> to vector<2x8x128xf32>
    %8 = arith.mulf %4, %7 : vector<2x8x128xf32>
    %c0_6 = arith.constant 0 : index
    %c0_7 = arith.constant 0 : index
    %9 = vector.load %arg4[%c0_6, %c0_7] : memref<8x8xf32, #tpu.memory_space<vmem>>, vector<8x8xf32>
    %c0_8 = arith.constant 0 : index
    %c0_9 = arith.constant 0 : index
    %10 = vector.load %arg5[%c0_8, %c0_9] : memref<8x128xf32, #tpu.memory_space<vmem>>, vector<8x128xf32>
    %11 = vector.extract_strided_slice %8 {offsets = [0, 0, 0], sizes = [1, 8, 128], strides = [1, 1, 1]} : vector<2x8x128xf32> to vector<1x8x128xf32>
    %12 = vector.shape_cast %11 : vector<1x8x128xf32> to vector<8x128xf32>
    %cst_10 = arith.constant dense<0.000000e+00> : vector<8x128xf32>
    %13 = tpu.matmul %9, %12, %cst_10 {dimension_numbers = #tpu.dot_dimension_numbers<[1], [0], [0], [1], [0, 0, 1, 1], [], []>} : vector<8x8xf32>, vector<8x128xf32>, vector<8x128xf32> -> vector<8x128xf32>
    %14 = arith.addf %13, %10 : vector<8x128xf32>
    %c0_11 = arith.constant 0 : index
    %c0_12 = arith.constant 0 : index
    %c0_13 = arith.constant 0 : index
    %15 = vector.load %arg6[%c0_11, %c0_12, %c0_13] : memref<2x8x128xf32, #tpu.memory_space<vmem>>, vector<1x8x128xf32>
    %16 = vector.shape_cast %15 : vector<1x8x128xf32> to vector<8x128xf32>
    %17 = vector.shape_cast %14 : vector<8x128xf32> to vector<1x8x128xf32>
    tpu.vector_store %arg6[%c0_11, %c0_12, %c0_13], %17 {strides = array<i32>} : memref<2x8x128xf32, #tpu.memory_space<vmem>>, vector<1x8x128xf32>,
    %18 = vector.extract_strided_slice %8 {offsets = [1, 0, 0], sizes = [1, 8, 128], strides = [1, 1, 1]} : vector<2x8x128xf32> to vector<1x8x128xf32>
    %19 = vector.shape_cast %18 : vector<1x8x128xf32> to vector<8x128xf32>
    %cst_14 = arith.constant dense<0.000000e+00> : vector<8x128xf32>
    %20 = tpu.matmul %9, %19, %cst_14 {dimension_numbers = #tpu.dot_dimension_numbers<[1], [0], [0], [1], [0, 0, 1, 1], [], []>} : vector<8x8xf32>, vector<8x128xf32>, vector<8x128xf32> -> vector<8x128xf32>
    %21 = arith.addf %20, %10 : vector<8x128xf32>
    %c1 = arith.constant 1 : index
    %c0_15 = arith.constant 0 : index
    %c0_16 = arith.constant 0 : index
    %22 = vector.load %arg6[%c1, %c0_15, %c0_16] : memref<2x8x128xf32, #tpu.memory_space<vmem>>, vector<1x8x128xf32>
    %23 = vector.shape_cast %22 : vector<1x8x128xf32> to vector<8x128xf32>
    %24 = vector.shape_cast %21 : vector<8x128xf32> to vector<1x8x128xf32>
    tpu.vector_store %arg6[%c1, %c0_15, %c0_16], %24 {strides = array<i32>} : memref<2x8x128xf32, #tpu.memory_space<vmem>>, vector<1x8x128xf32>,
    return
  }
  func.func @transform_0(%arg0: i32) -> (i32, i32, i32) {
    %c0_i32 = arith.constant 0 : i32
    %c0_i32_0 = arith.constant 0 : i32
    %c0_i32_1 = arith.constant 0 : i32
    return %arg0, %c0_i32, %c0_i32_0 : i32, i32, i32
  }
  func.func @transform_1(%arg0: i32) -> (i32, i32) {
    %c0_i32 = arith.constant 0 : i32
    %c0_i32_0 = arith.constant 0 : i32
    %c0_i32_1 = arith.constant 0 : i32
    return %c0_i32, %c0_i32_0 : i32, i32
  }
  func.func @transform_2(%arg0: i32) -> (i32, i32) {
    %c0_i32 = arith.constant 0 : i32
    %c0_i32_0 = arith.constant 0 : i32
    %c0_i32_1 = arith.constant 0 : i32
    return %c0_i32, %c0_i32_0 : i32, i32
  }
  func.func @transform_3(%arg0: i32) -> (i32, i32) {
    %c0_i32 = arith.constant 0 : i32
    %c0_i32_0 = arith.constant 0 : i32
    %c0_i32_1 = arith.constant 0 : i32
    return %c0_i32, %c0_i32_0 : i32, i32
  }
  func.func @transform_4(%arg0: i32) -> (i32, i32) {
    %c0_i32 = arith.constant 0 : i32
    %c0_i32_0 = arith.constant 0 : i32
    %c0_i32_1 = arith.constant 0 : i32
    return %c0_i32, %c0_i32_0 : i32, i32
  }
  func.func @transform_5(%arg0: i32) -> (i32, i32, i32) {
    %c0_i32 = arith.constant 0 : i32
    %c0_i32_0 = arith.constant 0 : i32
    %c0_i32_1 = arith.constant 0 : i32
    return %arg0, %c0_i32, %c0_i32_0 : i32, i32, i32
  }
}

</mosaic_0001>

<bundles_post_ra>
// kernel: tpu_custom_call.1
= control target key start
LH: loop header
LB: loop body
LE: loop exit
PB: predicated region body
PF: predicated region fallthrough
CT: control target
= control target key end

     0   :  { %10 = vsyncpa [#allocation3], 0  ;;  %s1273_s0 = inlined_call_operand.hbm [shape: f32[4,8,16], index: 0, kind: input, shape index: {}]   ;;  %s1274_s1 = inlined_call_operand.hbm [shape: f32[16,128], index: 1, kind: input, shape index: {}]   ;;  %s1275_s2 = inlined_call_operand.hbm [shape: f32[8,128], index: 2, kind: input, shape index: {}]   ;;  %s1276_s3 = inlined_call_operand.hbm [shape: f32[8,8], index: 3, kind: input, shape index: {}]   ;;  %s1277_s4 = inlined_call_operand.hbm [shape: f32[8,128], index: 4, kind: input, shape index: {}]   ;;  %s1278_s5 = inlined_call_operand.hbm [shape: f32[4,8,128], index: 5, kind: output, shape index: {}]  }
   0x1   :  { %12 = vsyncpa [#allocation3 + $0x1], 0 }
   0x2   :  { %13 = vsyncpa [#allocation6], 0 }
   0x3   :  { %14 = vsyncpa [#allocation9], 0 }
   0x4   :  { %15 = vsyncpa [#allocation4], 0 }
   0x5   :  { %17 = vsyncpa [#allocation4 + $0x1], 0  ;;  %s1055_s18 = smov 0   ;;  %s1057_s19 = smov 0  }
   0x6   :  { %s1059_s20 = smov 0   ;;  %s1061_s21 = smov 0  }
   0x7 LB: > { %s1076_s22 = sadd.s32 4294967295, %s1011_s21   ;;  %s660_s23 = sadd.s32 4294967294, %s1011_s21   ;;  %s1011_s21 = sphi %s1061_s21, %s1304_s21   ;;  %s1007_s20 = sphi %s1059_s20, %s1303_s20   ;;  %s1003_s19 = sphi %s1057_s19, %s1302_s19   ;;  %s999_s18 = sphi %s1055_s18, %s1301_s18  }
   0x8   : > { %p43_p0 = scmp.ne.s32.totalorder %s1003_s19, %s999_s18  ;;  %p1279_p1 = scmp.eq.s32.totalorder %s1076_s22, 0 }
   0x9   : > { %p157_p3 = scmp.eq.s32.totalorder %s660_s23, 1  ;;  %p661_p5 = scmp.ge.s32.totalorder %s1011_s21, 1 }
   0xa   : > { %p1085_p4 = por %p1279_p1, %p43_p0  ;;  %p164_p7 = scmp.lt.s32.totalorder %s1011_s21, 3 }
   0xb   : > { %p1090_p6 = por %p157_p3, %p43_p0  ;;  %s1013_s27 = smov [#allocation5]  }
   0xc   : > { %s1284_s24 = scalar_select %p1085_p4, 1, 0 }
   0xd   : > { %s1285_s25 = scalar_select %p1090_p6, 1, 0 }
   0xe   : > { %p1095_p8 = pnand %p661_p5, %p164_p7  ;;  %s176_s28 = sshll.u32 %s1013_s27, 4  ;;  %s177_s28 = int_to_ptr.vmem [resolvable:$true] %s176_s28 }
   0xf   : > { %s1014_s30 = smov [#allocation8]   ;;  %s1015_s7 = smov [#allocation7]  }
  0x10   : > { %s1286_s26 = scalar_select %p1095_p8, 1, 0 }
  0x11   : > { %p734_p9 = pneg %p1095_p8  ;;  %s201_s6 = sshll.u32 %s1014_s30, 4  ;;  %s202_s6 = int_to_ptr.vmem [resolvable:$true] %s201_s6 }
  0x12   : > { %s190_s8 = sshll.u32 %s1015_s7, 4  ;;  %s818_s9 = scalar_lea.vmem %s177_s28, 256  ;;  %s191_s8 = int_to_ptr.vmem [resolvable:$true] %s190_s8 }
  0x13   : > { %p1104_p11 = pnand %p734_p9, %p1279_p1  ;;  %p819_p13 = scmp.ne.s32.totalorder %s177_s28, %s818_s9 }
  0x14   : > { %p826_p5 = scmp.lt.s32.totalorder %s177_s28, %s177_s28  ;;  %p827_p7 = scmp.lt.s32.totalorder %s818_s9, %s818_s9 }
  0x15   : > { %p809_p12 = pneg %p1104_p11 }
  0x16   : > { %p828_p9 = por %p827_p7, %p826_p5 }
  0x17   : > { %p821_p0 = pnand %p819_p13, %p809_p12 }
  0x19   : > { %p822_p3 = pneg %p821_p0 }
  0x1b   : > { %p829_p10 = pnand %p828_p9, %p822_p3 }
  0x1d   : > { %832 = shalt.err (!%p829_p10)
}
  0x1e   : > { %s1281_s10 = smov 128   ;;  %s1017_s11 = smov 8  }
  0x1f   : > { %737 = dma.hbm_to_vmem [thread:$0]  (!%p1104_p11), %s1274_s1, 256, %s177_s28, [#allocation6], %s1281_s10, %s1281_s10, %s1017_s11  }
  0x20   : > { %s844_s14 = scalar_lea.vmem %s202_s6, 128  ;;  %p852_p3 = scmp.lt.s32.totalorder %s202_s6, %s202_s6 }
  0x21   : > { %p845_p13 = scmp.ne.s32.totalorder %s202_s6, %s844_s14  ;;  %p853_p10 = scmp.lt.s32.totalorder %s844_s14, %s844_s14 }
  0x23   : > { %p847_p0 = pnand %p845_p13, %p809_p12  ;;  %p854_p7 = por %p853_p10, %p852_p3 }
  0x25   : > { %p848_p5 = pneg %p847_p0 }
  0x27   : > { %p855_p9 = pnand %p854_p7, %p848_p5 }
  0x29   : > { %858 = shalt.err (!%p855_p9)
}
  0x2a   : > { %743 = dma.hbm_to_vmem [thread:$0]  (!%p1104_p11), %s1276_s3, 128, %s202_s6, [#allocation9]  }
  0x2b   : > { %s870_s17 = scalar_lea.vmem %s191_s8, 128  ;;  %p878_p0 = scmp.lt.s32.totalorder %s191_s8, %s191_s8 }
  0x2c   : > { %p871_p1 = scmp.ne.s32.totalorder %s191_s8, %s870_s17  ;;  %p879_p6 = scmp.lt.s32.totalorder %s870_s17, %s870_s17 }
  0x2e   : > { %p873_p2 = pnand %p871_p1, %p809_p12  ;;  %p880_p4 = por %p879_p6, %p878_p0 }
  0x30   : > { %p874_p13 = pneg %p873_p2 }
  0x32   : > { %p881_p3 = pnand %p880_p4, %p874_p13 }
  0x34   : > { %884 = shalt.err (!%p881_p3)
}
  0x35   : > { %740 = dma.hbm_to_vmem [thread:$0]  (!%p1104_p11), %s1275_s2, 128, %s191_s8, [#allocation6]  }
  0x36   : > { %s1018_s28 = smov [#allocation10]  }
  0x37   : > { %s212_s30 = sshll.u32 %s1018_s28, 4  ;;  %s213_s30 = int_to_ptr.vmem [resolvable:$true] %s212_s30 }
  0x38   : > { %s896_s6 = scalar_lea.vmem %s213_s30, 128  ;;  %p904_p10 = scmp.lt.s32.totalorder %s213_s30, %s213_s30 }
  0x39   : > { %p897_p5 = scmp.ne.s32.totalorder %s213_s30, %s896_s6  ;;  %p905_p6 = scmp.lt.s32.totalorder %s896_s6, %s896_s6 }
  0x3b   : > { %p899_p1 = pnand %p897_p5, %p809_p12  ;;  %p906_p4 = por %p905_p6, %p904_p10 }
  0x3d   : > { %p900_p2 = pneg %p899_p1 }
  0x3f   : > { %p907_p7 = pnand %p906_p4, %p900_p2 }
  0x41   : > { %910 = shalt.err (!%p907_p7)
}
  0x42   : > { %746 = dma.hbm_to_vmem [thread:$0]  (!%p1104_p11), %s1277_s4, 128, %s213_s30, [#allocation9]  }
  0x43   : > { %s1146_s8 = sadd.s32 1, %s1011_s21   ;;  %s30_s12 = sadd.s32 1, %s1007_s20 }
  0x44   : > { %s27_s29 = ssub.s32 %s1011_s21, %s1146_s8  ;;  %p37_p12 = scmp.ne.s32.totalorder %s1007_s20, %s1003_s19 }
  0x45   : > { %p28_p9 = scmp.eq.s32.totalorder %s27_s29, 0  ;;  %p38_p13 = scmp.eq.s32.totalorder %s1011_s21, 0 }
  0x46   : > { %p1288_p0 = scmp.eq.s32.totalorder %s1076_s22, 1  ;;  %p759_p5 = scmp.lt.s32.totalorder %s1011_s21, 2 }
  0x47   : > { %s1162_s14 = scalar_select %p28_p9, %s1007_s20, %s30_s12  }
  0x48   : > { %p1156_p3 = por %p1288_p0, %p37_p12  ;;  %p39_p1 = por %p38_p13, %p37_p12 }
  0x49   : > { %s223_s15 = sand.u32 1, %s1007_s20   ;;  %s687_s17 = sshll.u32 %s1011_s21, 8 }
  0x4a   : > { %s1289_s13 = scalar_select %p1156_p3, 1, 0 }
  0x4b   : > { %s667_s16 = sshll.u32 %s223_s15, 4  ;;  %s1169_s28 = scalar_lea.hbm %s1273_s0, %s687_s17 }
  0x4c   : > { %s227_s30 = scalar_lea.vmem [#allocation2], %s667_s16  ;;  %p1173_p11 = pnand %p759_p5, %p39_p1 }
  0x4d   : > { %s234_s6 = sshll.u32 %s227_s30, 4  ;;  %s1177_s9 = scalar_lea.sflag [#allocation3], %s223_s15  ;;  %s1171_s6 = int_to_ptr.vmem [resolvable:$true] %s234_s6 }
  0x4e   : > { %s911_s12 = scalar_lea.hbm %s1169_s28, 256  ;;  %p913_p10 = pneg %p1173_p11 }
  0x4f   : > { %p912_p2 = scmp.ne.s32.totalorder %s1169_s28, %s911_s12  ;;  %s916_s16 = scalar_lea.hbm %s1273_s0, 512 }
  0x50   : > { %p917_p7 = scmp.lt.s32.totalorder %s1169_s28, %s1273_s0  ;;  %p918_p12 = scmp.lt.s32.totalorder %s916_s16, %s911_s12 }
  0x51   : > { %p914_p6 = pnand %p913_p10, %p912_p2 }
  0x52   : > { %p919_p9 = por %p918_p12, %p917_p7 }
  0x53   : > { %p915_p4 = pneg %p914_p6 }
  0x55   : > { %p920_p13 = pnand %p919_p9, %p915_p4 }
  0x57   : > { %923 = shalt.err (!%p920_p13)
}
  0x58   : > { %s924_s15 = scalar_lea.vmem %s1171_s6, 256  ;;  %s1019_s30 = smov [#allocation2]  }
  0x59   : > { %p925_p0 = scmp.ne.s32.totalorder %s1171_s6, %s924_s15  ;;  %s929_s10 = sshll.u32 %s1019_s30, 4  ;;  %s930_s10 = int_to_ptr.vmem [resolvable:$false] %s929_s10 }
  0x5a   : > { %s931_s29 = scalar_lea.vmem %s930_s10, 512  ;;  %p932_p2 = scmp.lt.s32.totalorder %s1171_s6, %s930_s10 }
  0x5b   : > { %p927_p5 = pnand %p925_p0, %p913_p10  ;;  %p933_p6 = scmp.lt.s32.totalorder %s931_s29, %s924_s15 }
  0x5d   : > { %p928_p1 = pneg %p927_p5  ;;  %p934_p3 = por %p933_p6, %p932_p2 }
  0x5f   : > { %p935_p8 = pnand %p934_p3, %p928_p1 }
  0x61   : > { %938 = shalt.err (!%p935_p8)
}
  0x62   : > { %s1291_s12 = smov 128   ;;  %p1292_p10 = scmp.ne.s32.totalorder %s1286_s26, 0 }
  0x63   : > { %750 = dma.hbm_to_vmem [thread:$0]  (!%p1173_p11), %s1169_s28, 256, %s1171_s6, %s1177_s9, %s1291_s12, %s1291_s12, %s1017_s11  }
  0x64   : > { %246 = sbr.rel (%p1292_p10) target bundleno = 528 (0x210), region = 40  ;;  %s1204_s17 = sand.u32 (!%p1292_p10), 1, %s1003_s19  }
  0x65   : > { %s671_s10 = sshll.u32 (!%p1292_p10), %s1204_s17, 4  ;;  %s249_s16 = scalar_lea.sflag (!%p1292_p10), [#allocation3], %s1204_s17 }
  0x66   : > { %s252_s7 = scalar_lea.vmem (!%p1292_p10), [#allocation2], %s671_s10  ;;  %p1293_p8 = scmp.ne.s32.totalorder (!%p1292_p10), %s1284_s24, 0 }
  0x69   : > { %982 = dma.done.wait (%p1293_p8), %s249_s16, 256  }
  0x6a   : > { %984 = vsyncadd (%p1293_p8), %s249_s16, 4294967040  ;;  %p1294_p3 = scmp.eq.s32.totalorder %s1076_s22, 0 }
  0x6c   : > { %986 = dma.done.wait (%p1294_p3), [#allocation6], 384   ;;  %p1295_p11 = pmov %p1294_p3 }
  0x6d   : > { %p1296_p4 = pmov %p1294_p3 }
  0x6e   : > { %988 = vsyncadd (%p1295_p11), [#allocation6], 4294966912 }
  0x6f   : > { %990 = dma.done.wait (%p1296_p4), [#allocation9], 256   ;;  %p1297_p7 = pmov %p1294_p3 }
  0x70   : > { %vm301_vm0 = vcmask 130048   ;;  %v300_v0 = vld [vmem:[#allocation5 + $0x8] sm:$0xff]  ;;  %v299_v1 = vld [vmem:[#allocation5] sm:$0xff]  ;;  %v1020_v4 = vmov 0.0   ;;  %vm1021_vm1 = vmmov 0   ;;  %v383_v6 = vld [vmem:[#allocation7] sm:$0xff] }
  0x71   : > { %992 = vsyncadd (%p1297_p7), [#allocation9], 4294967040  ;;  %v297_v2 = vld [vmem:[%s252_s7] sm:$0xff]  ;;  %697 = vmatprep.subr.mxu0 %v300_v0  ;;  %v298_v3 = vld [vmem:[%s252_s7 + $0x8] sm:$0xff]  ;;  %704 = vmatprep.subr.mxu1 %v1020_v4  ;;  %vm388_vm2 = vcmask 64512   ;;  %s294_s24 = scalar_lea.vmem [#allocation11], %s671_s10 }
  0x72   : > { %701 = vmatprep.mubr.msk.f32.mxu0 %vm301_vm0, %v297_v2  ;;  %698 = vmatpush3.msra.mxu0 %v300_v0  ;;  %v386_v9 = vld [vmem:[#allocation8] sm:$0xff]  ;;  %v387_v11 = vld [vmem:[#allocation10] sm:$0xff]  ;;  %s549_s26 = sshll.u32 %s294_s24, 4  ;;  %s688_s11 = sshll.u32 %s1076_s22, 8  ;;  %s1225_s26 = int_to_ptr.vmem [resolvable:$true] %s549_s26 }
  0x73   : > { %699 = vmatprep.subr.mxu0 %v299_v1  ;;  %706 = vmatprep.mubr.msk.f32.mxu1 %vm1021_vm1, %v1020_v4  ;;  %s1230_s9 = scalar_lea.hbm %s1278_s5, %s688_s11  ;;  %s536_s23 = scalar_lea.sflag [#allocation4], %s1204_s17 }
  0x74   : > { %700 = vmatpush3.msra.mxu0 %v299_v1  ;;  %s939_s27 = scalar_lea.vmem %s1225_s26, 256  ;;  %p1298_p9 = scmp.ne.s32.totalorder %s1289_s13, 0 }
  0x75   : > { %702 = vmatmul.mubr.msk.f32.vlgmr.msra.gmra.mxu0 %vm301_vm0, %v298_v3  ;;  %p940_p12 = scmp.ne.s32.totalorder %s1225_s26, %s939_s27  ;;  %s1022_s22 = smov [#allocation11]  }
  0x76   : > { %s943_s15 = sshll.u32 %s1022_s22, 4  ;;  %s944_s15 = int_to_ptr.vmem [resolvable:$false] %s943_s15 }
  0x77   : > { %p941_p13 = pnand %p940_p12, %p1298_p9  ;;  %s945_s30 = scalar_lea.vmem %s944_s15, 512 }
  0x78   : > { %p946_p5 = scmp.lt.s32.totalorder %s1225_s26, %s944_s15  ;;  %p947_p1 = scmp.lt.s32.totalorder %s945_s30, %s939_s27 }
  0x79   : > { %p942_p0 = pneg %p941_p13 }
  0x7a   : > { %p948_p2 = por %p947_p1, %p946_p5 }
  0x7c   : > { %p949_p6 = pnand %p948_p2, %p942_p0 }
 0x135   : > { %v703_v5 = vpop.f32.mrf.mxu0 }
 0x136   : > { %v385_v10 = vmul.f32 %v703_v5, %v383_v6 }
 0x137   : > { %v374_v7 = vpop.f32.mrf.mxu0 }
 0x138   : > { %v384_v8 = vmul.f32 %v383_v6, %v374_v7 }
 0x13a   : > { %705 = vmatpush3.msra.mxu1 %v384_v8 }
 0x13b   : > { %707 = vmatmul.mubr.msk.f32.vlgmr.msra.gmra.mxu1 %vm388_vm2, %v386_v9  ;;  %709 = vmatprep.subr.mxu1 %v1020_v4 }
 0x13c   : > { %710 = vmatpush3.msra.mxu1 %v385_v10  ;;  %711 = vmatprep.mubr.msk.f32.mxu1 %vm1021_vm1, %v1020_v4 }
 0x13f   : > { %712 = vmatmul.mubr.msk.f32.vlgmr.msra.gmra.mxu1 %vm388_vm2, %v386_v9 }
 0x1fb   : > { %v458_v12 = vpop.f32.mrf.mxu1 }
 0x1fc   : > { %v459_v13 = vadd.f32 %v458_v12, %v387_v11 }
 0x1fd   : > { %v708_v14 = vpop.f32.mrf.mxu1 }
 0x1fe   : > { %462 = vst [vmem:[%s294_s24] sm:$0xff] %v459_v13 }
 0x1ff   : > { %v529_v15 = vpop.f32.mrf.mxu1 }
 0x200   : > { %v530_v16 = vadd.f32 %v529_v15, %v387_v11 }
 0x201   : > { %v713_v17 = vpop.f32.mrf.mxu1 }
 0x202   : > { %681 = vst [vmem:[%s294_s24 + $0x8] sm:$0xff] %v530_v16 }
 0x203   : > { %952 = shalt.err (!%p949_p6)
}
 0x204   : > { %s953_s29 = scalar_lea.hbm %s1230_s9, 256  ;;  %s957_s16 = scalar_lea.hbm %s1278_s5, 512 }
 0x205   : > { %p954_p10 = scmp.ne.s32.totalorder %s1230_s9, %s953_s29  ;;  %p958_p11 = scmp.lt.s32.totalorder %s1230_s9, %s1278_s5 }
 0x206   : > { %p959_p4 = scmp.lt.s32.totalorder %s957_s16, %s953_s29 }
 0x207   : > { %p955_p8 = pnand %p954_p10, %p1298_p9 }
 0x208   : > { %p960_p7 = por %p959_p4, %p958_p11 }
 0x209   : > { %p956_p3 = pneg %p955_p8 }
 0x20b   : > { %p961_p12 = pnand %p960_p7, %p956_p3 }
 0x20d   : > { %964 = shalt.err (!%p961_p12)
}
 0x20e   : > { %s1023_s11 = smov 128   ;;  %s1024_s28 = smov 8  }
 0x20f   : > { %732 = dma.vmem_to_hbm [thread:$0]  (%p1298_p9), %s1225_s26, 256, %s1230_s9, %s536_s23, %s1023_s11, %s1023_s11, %s1024_s28  }
 0x210 PF: > { %s564_s6 = sand.u32 1, %s999_s18   ;;  %p1299_p13 = scmp.ne.s32.totalorder %s1285_s25, 0 }
 0x211   : > { %p1300_p0 = scmp.ge.s32.totalorder %s1011_s21, 2  ;;  %s565_s27 = scalar_lea.sflag [#allocation4], %s564_s6 }
 0x213   : > { %p752_p5 = pnand %p1300_p0, %p1299_p13 }
 0x215   : > { %p753_p1 = pneg %p752_p5 }
 0x217   : > { %994 = dma.done.wait (%p753_p1), %s565_s27, 256  }
 0x218   : > { %996 = vsyncadd (%p753_p1), %s565_s27, 4294967040  ;;  %p20_p2 = scmp.ge.s32.totalorder %s1146_s8, 4   ;;  %s1301_s18 = smov %s1003_s19 }
 0x219   : > { %s1302_s19 = smov %s1007_s20  ;;  %s1303_s20 = smov %s1162_s14 }
 0x21a   : > { %s1304_s21 = smov %s1146_s8  ;;  %22 = sbr.rel (!%p20_p2) target bundleno = 7 (0x7), region = 102 }
 0x21f   :  { %570 = vsyncpa [#allocation3], 1 }
 0x220   :  { %572 = vsyncpa [#allocation3 + $0x1], 1 }
 0x221   :  { %573 = vsyncpa [#allocation6], 1 }
 0x222   :  { %574 = vsyncpa [#allocation9], 1 }
 0x223   :  { %575 = vsyncpa [#allocation4], 1 }
 0x224   :  { %577 = vsyncpa [#allocation4 + $0x1], 1 }

</bundles_post_ra>
